<compile_context>
chip_gen: v5e
topology: v5e:2x2
jax: 0.10.0
libtpu: 0.0.40
codegen_flags: <defaults>
</compile_context>

<pallas_src>
import functools

import jax
import jax.numpy as jnp
from jax.experimental import pallas as pl
from jax.experimental.pallas import tpu as pltpu


# ----------------------------- Pallas kernel --------------------------------
def elmo_combine_kernel(w_ref, e_ref, h1f_ref, h1r_ref, h2f_ref, h2r_ref, out_ref):
    """Weighted mix of biLM layer representations for one (tm, .) row tile.

    w_ref:              (3,) f32 SMEM   -- gamma already folded in (w_eff = gamma*W)
    e_ref:              (tm, E)  VMEM   -- embedding layer (shared by both halves)
    h1f/h1r/h2f/h2r:    (tm, E)  VMEM   -- per-direction halves of biLM layers 1, 2
    out_ref:            (tm, 2E) VMEM   -- [forward half | reverse half]
    """
    E = e_ref.shape[1]
    f32 = jnp.float32
    w0 = w_ref[0]
    w1 = w_ref[1]
    w2 = w_ref[2]
    we = w0 * e_ref[...].astype(f32)          # layer-0 term, reused by both halves
    fwd = we + w1 * h1f_ref[...].astype(f32) + w2 * h2f_ref[...].astype(f32)
    rev = we + w1 * h1r_ref[...].astype(f32) + w2 * h2r_ref[...].astype(f32)
    out_ref[:, 0:E] = fwd.astype(out_ref.dtype)
    out_ref[:, E:2 * E] = rev.astype(out_ref.dtype)


# ------------------------- generation-aware tiling ---------------------------
def _tpu_generation_info():
    """(num_tensorcores_per_chip, per-TC VMEM capacity bytes), with safe defaults."""
    vmem_cap = 128 * 1024 * 1024
    try:
        info = pltpu.get_tpu_info()
        vmem_cap = int(getattr(info, "vmem_capacity_bytes", vmem_cap)) or vmem_cap
    except Exception:
        pass
    kind = ""
    try:
        kind = jax.devices()[0].device_kind.lower()
    except Exception:
        pass
    two_tc = "v7" in kind
    if two_tc:
        vmem_cap = min(vmem_cap, 64 * 1024 * 1024)   # v7x: 64 MiB per TC
    return (2 if two_tc else 1), vmem_cap


def _pick_tm(M, E, itemsize, num_tc, vmem_cap_bytes):
    """Largest legal row tile for the 7-stream combine.

    - multiple of 8 (f32) / 16 (bf16) for sublane alignment,
    - divides M (no tail handling),
    - double-buffered working set stays within ~half the per-TC VMEM,
    - cap 2048 rows (per-step overhead already well amortized there),
    - on multi-TC chips prefer >= num_tc (and a multiple of num_tc) grid steps
      so dimension_semantics=("parallel",) shards across both TensorCores.
    """
    row_align = 16 if itemsize < 4 else 8
    # 5 input streams of width E + 1 output stream of width 2E, double-buffered.
    bytes_per_row = 7 * E * itemsize * 2
    budget = max(vmem_cap_bytes // 2, 8 << 20)
    cap = max(row_align, min(2048, budget // bytes_per_row))
    divisors = [d for d in range(row_align, min(M, cap) + 1, row_align) if M % d == 0]
    if not divisors:
        return M  # full-first-dim block is always legal
    if num_tc > 1:
        multi = [d for d in divisors if (M // d) >= num_tc and (M // d) % num_tc == 0]
        if multi:
            return max(multi)
        multi = [d for d in divisors if (M // d) >= num_tc]
        if multi:
            return max(multi)
    return max(divisors)


# --------------------------- combine entry point ------------------------------
def _combine_ref(w_eff, e, h1f, h1r, h2f, h2r):
    """Plain-jnp reference / small-M fallback (same f32 math as the kernel)."""
    f32 = jnp.float32
    we = w_eff[0] * e.astype(f32)
    fwd = we + w_eff[1] * h1f.astype(f32) + w_eff[2] * h2f.astype(f32)
    rev = we + w_eff[1] * h1r.astype(f32) + w_eff[2] * h2r.astype(f32)
    return jnp.concatenate([fwd, rev], axis=-1).astype(e.dtype)


def elmo_combine(w, gamma, embed_seq, h1f, h1r, h2f, h2r, *, min_rows_for_pallas=256):
    """gamma * (w0*concat(embed,embed,-1) + w1*[h1f|h1r] + w2*[h2f|h2r])."""
    B, T, E = embed_seq.shape
    M = B * T
    dtype = embed_seq.dtype
    itemsize = jnp.dtype(dtype).itemsize

    # Fold gamma into W on the host: removes one SMEM operand and one
    # per-tile vector multiply inside the kernel.
    w_eff = (gamma[0] * w).astype(jnp.float32)

    # Tiny-M fallback: the pallas_call per-step overhead and 7 DMA descriptors
    # per step dwarf the actual work; let XLA fuse the elementwise mix instead.
    if M < min_rows_for_pallas:
        return _combine_ref(w_eff, embed_seq, h1f, h1r, h2f, h2r)

    num_tc, vmem_cap = _tpu_generation_info()
    tm = _pick_tm(M, E, itemsize, num_tc, vmem_cap)
    assert M % tm == 0, "row tile must divide M (no tail handling needed here)"

    # Explicit scoped-VMEM limit: double-buffered working set + headroom,
    # never above ~3/4 of the physical per-TC VMEM.
    working = 2 * 7 * tm * E * itemsize
    vmem_limit = int(min(vmem_cap * 3 // 4,
                         max(32 << 20, working * 3 // 2 + (8 << 20))))

    e2 = embed_seq.reshape(M, E)
    flat = lambda x: x.reshape(M, E)
    row_spec = lambda i: (i, 0)

    out = pl.pallas_call(
        elmo_combine_kernel,
        out_shape=jax.ShapeDtypeStruct((M, 2 * E), dtype),
        grid=(M // tm,),
        in_specs=[
            pl.BlockSpec(memory_space=pltpu.MemorySpace.SMEM),  # w_eff (3,)
            pl.BlockSpec((tm, E), row_spec),                    # embed
            pl.BlockSpec((tm, E), row_spec),                    # h1 fwd half
            pl.BlockSpec((tm, E), row_spec),                    # h1 rev half
            pl.BlockSpec((tm, E), row_spec),                    # h2 fwd half
            pl.BlockSpec((tm, E), row_spec),                    # h2 rev half
        ],
        out_specs=pl.BlockSpec((tm, 2 * E), row_spec),
        compiler_params=pltpu.CompilerParams(
            dimension_semantics=("parallel",),
            vmem_limit_bytes=vmem_limit),
    )(w_eff, e2, flat(h1f), flat(h1r), flat(h2f), flat(h2r))
    return out.reshape(B, T, 2 * E)


# ----------------------- deterministic biLM stand-in -------------------------
# The real biLM is an arbitrary external nn.Module (frozen).  This stand-in
# produces tensors of the shapes ELMo.forward consumes, returning the hidden
# states as per-direction halves so no (B,T,2E) concat is materialized just to
# feed the combine kernel.
# TODO(synk): pack_padded_sequence / seq_lens masking of the real biLM is not
# modeled in this synthetic stand-in.
def make_bilm_params(key, vocab, embed):
    k = jax.random.split(key, 6)
    scale = 0.1
    return {
        "emb": scale * jax.random.normal(k[0], (vocab, embed), jnp.float32),
        "w1f": scale * jax.random.normal(k[1], (embed, embed), jnp.float32),
        "w1r": scale * jax.random.normal(k[2], (embed, embed), jnp.float32),
        "w2f": scale * jax.random.normal(k[3], (embed, embed), jnp.float32),
        "w2r": scale * jax.random.normal(k[4], (embed, embed), jnp.float32),
        "wout": scale * jax.random.normal(k[5], (2 * embed, vocab), jnp.float32),
    }


def bilm_forward(params, input_fwd, input_rev, seq_lens):
    del seq_lens  # not modeled in the synthetic stand-in
    E = params["emb"].shape[1]
    emb_f = params["emb"][input_fwd]          # (B, T, E)
    emb_r = params["emb"][input_rev]          # (B, T, E)
    h1f = jnp.tanh(emb_f @ params["w1f"])     # (B, T, E)
    h1r = jnp.tanh(emb_r @ params["w1r"])     # (B, T, E)
    h2f = jnp.tanh(h1f @ params["w2f"])       # (B, T, E)
    h2r = jnp.tanh(h1r @ params["w2r"])       # (B, T, E)
    # bilm_out = concat(h2f, h2r) @ wout, computed without materializing the concat.
    bilm_out = h2f @ params["wout"][:E] + h2r @ params["wout"][E:]   # (B, T, V)
    embed_seq = emb_f                                                # (B, T, E)
    return bilm_out, (h1f, h1r, h2f, h2r), embed_seq


# --------------------------------- ELMo --------------------------------------
def elmo_forward(bilm_params, W, gamma, input_fwd, input_rev, seq_lens,
                 *, min_rows_for_pallas=256):
    bilm_out, (h1f, h1r, h2f, h2r), embed_seq = bilm_forward(
        bilm_params, input_fwd, input_rev, seq_lens)
    elmo_embedding = elmo_combine(W, gamma, embed_seq, h1f, h1r, h2f, h2r,
                                  min_rows_for_pallas=min_rows_for_pallas)
    return elmo_embedding, bilm_out


if __name__ == "__main__":
    # Small but lane-dense shapes: E = 128 -> output last dim 2E = 256.
    B, T, E, V = 2, 8, 128, 16

    key = jax.random.PRNGKey(0)
    k_params, k_tok = jax.random.split(key)

    bilm_params = make_bilm_params(k_params, V, E)

    # ELMo parameters, matching the PyTorch __init__ defaults:
    #   W = [1/3, 1/3, 1/3], gamma = [1.0]
    W = jnp.full((3,), 1.0 / 3.0, dtype=jnp.float32)
    gamma = jnp.ones((1,), dtype=jnp.float32)

    input_fwd = jax.random.randint(k_tok, (B, T), 0, V, dtype=jnp.int32)
    input_rev = jnp.flip(input_fwd, axis=1)
    seq_lens = jnp.full((B,), T, dtype=jnp.int32)

    # Force the Pallas path at this toy M (=16) so the kernel is exercised;
    # in production the default threshold routes tiny M to the fused jnp path.
    fwd_pallas = jax.jit(functools.partial(elmo_forward, min_rows_for_pallas=0))
    elmo_emb, bilm_out = fwd_pallas(bilm_params, W, gamma, input_fwd, input_rev, seq_lens)
    elmo_emb = jax.block_until_ready(elmo_emb)
    bilm_out = jax.block_until_ready(bilm_out)

    # Reference check in plain JAX (mirrors the PyTorch forward exactly).
    _, (h1f, h1r, h2f, h2r), es = bilm_forward(
        bilm_params, input_fwd, input_rev, seq_lens)
    h1 = jnp.concatenate([h1f, h1r], axis=-1)
    h2 = jnp.concatenate([h2f, h2r], axis=-1)
    ref = W[0] * jnp.concatenate([es, es], axis=2)
    ref = ref + W[1] * h1 + W[2] * h2
    ref = ref * gamma

    assert elmo_emb.shape == (B, T, 2 * E)
    assert jnp.allclose(elmo_emb, ref, atol=1e-6), "Pallas path mismatch vs reference"

    # Default (small-M fallback) path must match too.
    emb_fb, _ = jax.jit(elmo_forward)(bilm_params, W, gamma, input_fwd, input_rev, seq_lens)
    emb_fb = jax.block_until_ready(emb_fb)
    assert jnp.allclose(emb_fb, ref, atol=1e-6), "fallback path mismatch vs reference"

    # bf16 I/O path through the Pallas kernel (halves HBM traffic at real sizes;
    # the kernel upcasts to f32 internally and casts on store).
    bf16 = jnp.bfloat16
    emb_bf16 = elmo_combine(W, gamma, es.astype(bf16),
                            h1f.astype(bf16), h1r.astype(bf16),
                            h2f.astype(bf16), h2r.astype(bf16),
                            min_rows_for_pallas=0)
    emb_bf16 = jax.block_until_ready(emb_bf16)
    assert emb_bf16.dtype == bf16
    assert jnp.allclose(emb_bf16.astype(jnp.float32), ref, atol=3e-2, rtol=3e-2), \
        "bf16 Pallas path mismatch vs reference"

    print("KERNEL_OK")
</pallas_src>

<mosaic_0001>
module attributes {stable_mosaic.version = 11 : i64} {
  func.func @elmo_combine_kernel(%arg0: i32, %arg1: memref<3xf32, #tpu.memory_space<smem>>, %arg2: memref<16x128xf32, #tpu.memory_space<vmem>>, %arg3: memref<16x128xf32, #tpu.memory_space<vmem>>, %arg4: memref<16x128xf32, #tpu.memory_space<vmem>>, %arg5: memref<16x128xf32, #tpu.memory_space<vmem>>, %arg6: memref<16x128xf32, #tpu.memory_space<vmem>>, %arg7: memref<16x256xf32, #tpu.memory_space<vmem>>) attributes {dimension_semantics = [#tpu.dimension_semantics<parallel>], iteration_bounds = array<i64: 1>, scalar_prefetch = 0 : i64, scratch_operands = 0 : i64, tpu.core_type = #tpu.core_type<tc>, window_params = [{transform_indices = @transform_0, window_bounds = array<i64: 3>}, {transform_indices = @transform_1, window_bounds = array<i64: 16, 128>}, {transform_indices = @transform_2, window_bounds = array<i64: 16, 128>}, {transform_indices = @transform_3, window_bounds = array<i64: 16, 128>}, {transform_indices = @transform_4, window_bounds = array<i64: 16, 128>}, {transform_indices = @transform_5, window_bounds = array<i64: 16, 128>}, {transform_indices = @transform_6, window_bounds = array<i64: 16, 256>}]} {
    %c0 = arith.constant 0 : index
    %0 = memref.load %arg1[%c0] : memref<3xf32, #tpu.memory_space<smem>>
    %c1 = arith.constant 1 : index
    %1 = memref.load %arg1[%c1] : memref<3xf32, #tpu.memory_space<smem>>
    %c2 = arith.constant 2 : index
    %2 = memref.load %arg1[%c2] : memref<3xf32, #tpu.memory_space<smem>>
    %c0_0 = arith.constant 0 : index
    %c0_1 = arith.constant 0 : index
    %3 = vector.load %arg2[%c0_0, %c0_1] : memref<16x128xf32, #tpu.memory_space<vmem>>, vector<16x128xf32>
    %4 = vector.broadcast %0 : f32 to vector<16x128xf32>
    %5 = arith.mulf %4, %3 : vector<16x128xf32>
    %c0_2 = arith.constant 0 : index
    %c0_3 = arith.constant 0 : index
    %6 = vector.load %arg3[%c0_2, %c0_3] : memref<16x128xf32, #tpu.memory_space<vmem>>, vector<16x128xf32>
    %7 = vector.broadcast %1 : f32 to vector<16x128xf32>
    %8 = arith.mulf %7, %6 : vector<16x128xf32>
    %9 = arith.addf %5, %8 : vector<16x128xf32>
    %c0_4 = arith.constant 0 : index
    %c0_5 = arith.constant 0 : index
    %10 = vector.load %arg5[%c0_4, %c0_5] : memref<16x128xf32, #tpu.memory_space<vmem>>, vector<16x128xf32>
    %11 = vector.broadcast %2 : f32 to vector<16x128xf32>
    %12 = arith.mulf %11, %10 : vector<16x128xf32>
    %13 = arith.addf %9, %12 : vector<16x128xf32>
    %c0_6 = arith.constant 0 : index
    %c0_7 = arith.constant 0 : index
    %14 = vector.load %arg4[%c0_6, %c0_7] : memref<16x128xf32, #tpu.memory_space<vmem>>, vector<16x128xf32>
    %15 = vector.broadcast %1 : f32 to vector<16x128xf32>
    %16 = arith.mulf %15, %14 : vector<16x128xf32>
    %17 = arith.addf %5, %16 : vector<16x128xf32>
    %c0_8 = arith.constant 0 : index
    %c0_9 = arith.constant 0 : index
    %18 = vector.load %arg6[%c0_8, %c0_9] : memref<16x128xf32, #tpu.memory_space<vmem>>, vector<16x128xf32>
    %19 = vector.broadcast %2 : f32 to vector<16x128xf32>
    %20 = arith.mulf %19, %18 : vector<16x128xf32>
    %21 = arith.addf %17, %20 : vector<16x128xf32>
    %c0_10 = arith.constant 0 : index
    %c0_11 = arith.constant 0 : index
    %22 = vector.load %arg7[%c0_10, %c0_11] : memref<16x256xf32, #tpu.memory_space<vmem>>, vector<16x128xf32>
    tpu.vector_store %arg7[%c0_10, %c0_11], %13 {strides = array<i32>} : memref<16x256xf32, #tpu.memory_space<vmem>>, vector<16x128xf32>,
    %c0_12 = arith.constant 0 : index
    %c128 = arith.constant 128 : index
    %23 = vector.load %arg7[%c0_12, %c128] : memref<16x256xf32, #tpu.memory_space<vmem>>, vector<16x128xf32>
    tpu.vector_store %arg7[%c0_12, %c128], %21 {strides = array<i32>} : memref<16x256xf32, #tpu.memory_space<vmem>>, vector<16x128xf32>,
    return
  }
  func.func @transform_0(%arg0: i32) -> i32 {
    %c0_i32 = arith.constant 0 : i32
    %c0_i32_0 = arith.constant 0 : i32
    return %c0_i32 : i32
  }
  func.func @transform_1(%arg0: i32) -> (i32, i32) {
    %c0_i32 = arith.constant 0 : i32
    %c0_i32_0 = arith.constant 0 : i32
    return %arg0, %c0_i32 : i32, i32
  }
  func.func @transform_2(%arg0: i32) -> (i32, i32) {
    %c0_i32 = arith.constant 0 : i32
    %c0_i32_0 = arith.constant 0 : i32
    return %arg0, %c0_i32 : i32, i32
  }
  func.func @transform_3(%arg0: i32) -> (i32, i32) {
    %c0_i32 = arith.constant 0 : i32
    %c0_i32_0 = arith.constant 0 : i32
    return %arg0, %c0_i32 : i32, i32
  }
  func.func @transform_4(%arg0: i32) -> (i32, i32) {
    %c0_i32 = arith.constant 0 : i32
    %c0_i32_0 = arith.constant 0 : i32
    return %arg0, %c0_i32 : i32, i32
  }
  func.func @transform_5(%arg0: i32) -> (i32, i32) {
    %c0_i32 = arith.constant 0 : i32
    %c0_i32_0 = arith.constant 0 : i32
    return %arg0, %c0_i32 : i32, i32
  }
  func.func @transform_6(%arg0: i32) -> (i32, i32) {
    %c0_i32 = arith.constant 0 : i32
    %c0_i32_0 = arith.constant 0 : i32
    return %arg0, %c0_i32 : i32, i32
  }
}

</mosaic_0001>

<bundles_post_ra>
// kernel: elmo_forward.1
= control target key start
LH: loop header
LB: loop body
LE: loop exit
PB: predicated region body
PF: predicated region fallthrough
CT: control target
= control target key end

     0   :  { %11 = vsyncpa [#allocation4], 0  ;;  %s215_s0 = inlined_call_operand.vmem [shape: f32[3], index: 0, kind: input, shape index: {}]   ;;  %s216_s1 = inlined_call_operand.vmem [shape: f32[16,128], index: 1, kind: input, shape index: {}]   ;;  %s217_s2 = inlined_call_operand.vmem [shape: f32[16,128], index: 2, kind: input, shape index: {}]   ;;  %s218_s3 = inlined_call_operand.vmem [shape: f32[16,128], index: 3, kind: input, shape index: {}]   ;;  %s219_s4 = inlined_call_operand.vmem [shape: f32[16,128], index: 4, kind: input, shape index: {}]   ;;  %s220_s5 = inlined_call_operand.vmem [shape: f32[16,128], index: 5, kind: input, shape index: {}]   ;;  %s221_s6 = inlined_call_operand.hbm [shape: f32[16,256], index: 6, kind: output, shape index: {}]  }
   0x1   :  { %12 = vsyncpa [#allocation3], 0  ;;  %s18_s23 = sshll.u32 %s215_s0, 4  ;;  %s140_s24 = smov [#allocation2]   ;;  %s19_s23 = int_to_ptr.vmem [resolvable:$true] %s18_s23 }
   0x2   :  { %21 = dma.vmem_to_smem %s19_s23, 16, %s140_s24, [#allocation4]  }
   0x3   :  { %136 = dma.done.wait [#allocation4], 16  }
   0x4   :  { %137 = vsyncadd [#allocation4], 4294967280 }
   0x5   :  { %36 = sfence }
   0x6   :  { %s37_s25 = sld [smem:[#allocation2]]  ;;  %v40_v0 = vld [vmem:[%s216_s1] sm:$0xff]  ;;  %v41_v2 = vld [vmem:[%s216_s1 + $0x8] sm:$0xff]  ;;  %s81_s22 = sshll.u32 %s221_s6, 4  ;;  %s82_s22 = int_to_ptr.hbm [resolvable:$true] %s81_s22 }
   0x7   :  { %s94_s26 = sld [smem:[#allocation2 + $0x1]]  ;;  %v45_v1 = vld [vmem:[%s217_s2] sm:$0xff]  ;;  %v46_v4 = vld [vmem:[%s217_s2 + $0x8] sm:$0xff]  ;;  %s142_s23 = smov 256  }
   0x8   :  { %s95_s27 = sld [smem:[#allocation2 + $0x2]]  ;;  %v52_v3 = vld [vmem:[%s219_s4] sm:$0xff]  ;;  %v53_v7 = vld [vmem:[%s219_s4 + $0x8] sm:$0xff]  ;;  %s143_s24 = smov 16  }
   0x9   :  { %v59_v5 = vld [vmem:[%s218_s3] sm:$0xff]  ;;  %v60_v9 = vld [vmem:[%s218_s3 + $0x8] sm:$0xff]  ;;  %s141_s3 = smov [#allocation5]  }
   0xa   :  { %v65_v8 = vld [vmem:[%s220_s5] sm:$0xff]  ;;  %v66_v13 = vld [vmem:[%s220_s5 + $0x8] sm:$0xff]  ;;  %s79_s4 = sshll.u32 %s141_s3, 4  ;;  %s80_s4 = int_to_ptr.vmem [resolvable:$true] %s79_s4 }
   0xc   :  { %v42_v6 = vstv %s37_s25 }
   0xd   :  { %v43_v10 = vmul.f32 %v42_v6, %v40_v0  ;;  %v47_v11 = vstv %s94_s26  ;;  %v44_v12 = vmul.f32 %v42_v6, %v41_v2 }
   0xe   :  { %v48_v14 = vmul.f32 %v47_v11, %v45_v1  ;;  %v54_v15 = vstv %s95_s27  ;;  %v49_v16 = vmul.f32 %v47_v11, %v46_v4  ;;  %v61_v17 = vmul.f32 %v59_v5, %v47_v11 }
   0xf   :  { %v55_v18 = vmul.f32 %v54_v15, %v52_v3  ;;  %v56_v19 = vmul.f32 %v54_v15, %v53_v7  ;;  %v67_v20 = vmul.f32 %v65_v8, %v54_v15  ;;  %v62_v21 = vmul.f32 %v60_v9, %v47_v11 }
  0x10   :  { %v50_v22 = vadd.f32 %v48_v14, %v43_v10  ;;  %v51_v23 = vadd.f32 %v49_v16, %v44_v12  ;;  %v63_v24 = vadd.f32 %v61_v17, %v43_v10  ;;  %v68_v25 = vmul.f32 %v66_v13, %v54_v15 }
  0x11   :  { %v64_v26 = vadd.f32 %v62_v21, %v44_v12 }
  0x12   :  { %v57_v27 = vadd.f32 %v55_v18, %v50_v22  ;;  %v58_v28 = vadd.f32 %v56_v19, %v51_v23  ;;  %v69_v29 = vadd.f32 %v67_v20, %v63_v24 }
  0x13   :  { %v70_v30 = vadd.f32 %v68_v25, %v64_v26 }
  0x14   :  { %71 = vst [vmem:[#allocation5] sm:$0xff] %v57_v27 }
  0x15   :  { %72 = vst [vmem:[#allocation5 + $0x10] sm:$0xff] %v58_v28 }
  0x16   :  { %73 = vst [vmem:[#allocation5 + $0x8] sm:$0xff] %v69_v29 }
  0x17   :  { %74 = vst [vmem:[#allocation5 + $0x18] sm:$0xff] %v70_v30 }
  0x18   :  { %87 = dma.vmem_to_hbm [thread:$0]  %s80_s4, 512, %s82_s22, [#allocation3], %s142_s23, %s142_s23, %s143_s24  }
  0x19   :  { %138 = dma.done.wait [#allocation3], 512  }
  0x1a   :  { %139 = vsyncadd [#allocation3], 4294966784 }
  0x1b   :  { %92 = vsyncpa [#allocation3], 1 }
  0x1c   :  { %93 = vsyncpa [#allocation4], 1 }

</bundles_post_ra>
